<compile_context>
chip_gen: v7x
topology: tpu7x:2x2x1
jax: 0.10.0
libtpu: 0.0.40
codegen_flags: <defaults>
</compile_context>

<pallas_src>
import math
from functools import partial

import jax
import jax.numpy as jnp
from jax.experimental import pallas as pl
from jax.experimental.pallas import tpu as pltpu


# ------------------------------- helpers ------------------------------------

def _pick_tile(dim, candidates):
    """Largest candidate tile that evenly divides `dim`; else the full dim."""
    for c in candidates:
        if c <= dim and dim % c == 0:
            return c
    return dim


_VMEM_LIMIT = 48 * 1024 * 1024  # below v7x's 64 MiB physical, above scoped defaults


# --------------------------- tiled linear kernel -----------------------------

def _linear_kernel(x_ref, w_ref, b_ref, o_ref, acc_ref):
    # grid = (M//tm, N//tn, K//tk); K is the innermost (reduction) axis.
    @pl.when(pl.program_id(2) == 0)
    def _():
        acc_ref[...] = jnp.zeros_like(acc_ref)

    acc_ref[...] += jnp.dot(x_ref[...], w_ref[...],
                            preferred_element_type=jnp.float32)

    @pl.when(pl.program_id(2) == pl.num_programs(2) - 1)
    def _():
        o_ref[...] = (acc_ref[...] + b_ref[...]).astype(o_ref.dtype)


def linear(x2d, w_t, bias):
    """y = x2d @ w_t + bias.  w_t is pre-transposed [Din, Dout], bias [Dout]."""
    m, kdim = x2d.shape
    n = w_t.shape[1]
    tm = _pick_tile(m, (512, 256, 128))
    tn = _pick_tile(n, (512, 256, 128))
    tk = _pick_tile(kdim, (512, 256, 128))
    b2d = bias.reshape(1, n)
    grid = (m // tm, n // tn, kdim // tk)
    return pl.pallas_call(
        _linear_kernel,
        out_shape=jax.ShapeDtypeStruct((m, n), x2d.dtype),
        grid_spec=pltpu.PrefetchScalarGridSpec(
            num_scalar_prefetch=0,
            grid=grid,
            in_specs=[
                pl.BlockSpec((tm, tk), lambda i, j, k: (i, k)),
                pl.BlockSpec((tk, tn), lambda i, j, k: (k, j)),
                pl.BlockSpec((1, tn), lambda i, j, k: (0, j)),
            ],
            out_specs=pl.BlockSpec((tm, tn), lambda i, j, k: (i, j)),
            scratch_shapes=[pltpu.VMEM((tm, tn), jnp.float32)],
        ),
        compiler_params=pltpu.CompilerParams(
            dimension_semantics=("parallel", "parallel", "arbitrary"),
            vmem_limit_bytes=_VMEM_LIMIT,
        ),
    )(x2d, w_t, b2d)


# ------------------------ flash-style attention core -------------------------

def _flash_attn_kernel(q_ref, k_ref, v_ref, *rest, has_mask):
    if has_mask:
        m_ref, o_ref, m_sc, l_sc, acc_sc = rest
    else:
        o_ref, m_sc, l_sc, acc_sc = rest
        m_ref = None

    kv = pl.program_id(2)

    @pl.when(kv == 0)
    def _():
        m_sc[...] = jnp.full_like(m_sc, -jnp.inf)
        l_sc[...] = jnp.zeros_like(l_sc)
        acc_sc[...] = jnp.zeros_like(acc_sc)

    # q is already scaled by 1/sqrt(head_dim) (folded into in_proj weights).
    q = q_ref[...]                                     # (nh, tq, hd)
    k = k_ref[...]                                     # (nh, tk, hd)
    s = jnp.einsum("hqd,hkd->hqk", q, k,
                   preferred_element_type=jnp.float32)  # (nh, tq, tk)
    if has_mask:
        s = s + m_ref[...]                             # (1, tq, tk) -> broadcast heads

    m_new = jnp.maximum(m_sc[...], jnp.max(s, axis=-1, keepdims=True))
    alpha = jnp.exp(m_sc[...] - m_new)
    p = jnp.exp(s - m_new)
    l_sc[...] = alpha * l_sc[...] + jnp.sum(p, axis=-1, keepdims=True)
    acc_sc[...] = alpha * acc_sc[...] + jnp.einsum(
        "hqk,hkd->hqd", p.astype(v_ref.dtype), v_ref[...],
        preferred_element_type=jnp.float32)
    m_sc[...] = m_new

    @pl.when(kv == pl.num_programs(2) - 1)
    def _():
        o_ref[...] = (acc_sc[...] *
                      pl.reciprocal(l_sc[...], approx=True)).astype(o_ref.dtype)


def attention_core(q, k, v, attn_mask=None):
    """q, k, v: [b, nh, sq, hd] (q pre-scaled).  attn_mask: None or additive
    [sq, sq] / [1, sq, sq] bias shared across batch*heads.  Returns [b, nh, sq, hd]."""
    # TODO(synk): per-(batch*head) attn_mask variants are not fused here; only a
    # shared mask (the common Qwen-VL case) or None is supported.
    b, nh, sq, hd = q.shape
    tq = _pick_tile(sq, (256, 128))
    tk = _pick_tile(sq, (256, 128))
    grid = (b, sq // tq, sq // tk)

    q_spec = pl.BlockSpec((None, nh, tq, hd), lambda bi, qi, ki: (bi, 0, qi, 0))
    kv_spec = pl.BlockSpec((None, nh, tk, hd), lambda bi, qi, ki: (bi, 0, ki, 0))
    o_spec = pl.BlockSpec((None, nh, tq, hd), lambda bi, qi, ki: (bi, 0, qi, 0))

    in_specs = [q_spec, kv_spec, kv_spec]
    operands = [q, k, v]
    has_mask = attn_mask is not None
    if has_mask:
        mask3 = attn_mask.reshape(1, sq, sq).astype(jnp.float32)   # single copy
        in_specs.append(
            pl.BlockSpec((1, tq, tk), lambda bi, qi, ki: (0, qi, ki)))
        operands.append(mask3)

    kern = partial(_flash_attn_kernel, has_mask=has_mask)
    return pl.pallas_call(
        kern,
        out_shape=jax.ShapeDtypeStruct((b, nh, sq, hd), q.dtype),
        grid_spec=pltpu.PrefetchScalarGridSpec(
            num_scalar_prefetch=0,
            grid=grid,
            in_specs=in_specs,
            out_specs=o_spec,
            scratch_shapes=[
                pltpu.VMEM((nh, tq, 1), jnp.float32),    # running max m
                pltpu.VMEM((nh, tq, 1), jnp.float32),    # running sum l
                pltpu.VMEM((nh, tq, hd), jnp.float32),   # accumulator
            ],
        ),
        compiler_params=pltpu.CompilerParams(
            dimension_semantics=("parallel", "parallel", "arbitrary"),
            vmem_limit_bytes=_VMEM_LIMIT,
        ),
    )(*operands)


# ------------------------------ module wrapper --------------------------------

class VisualAttentionParams:
    def __init__(self, embed_dim, num_heads, key):
        assert embed_dim % num_heads == 0
        self.embed_dim = embed_dim
        self.num_heads = num_heads
        self.head_dim = embed_dim // num_heads
        self.norm_factor = math.sqrt(self.head_dim)
        k1, k2, k3, k4 = jax.random.split(key, 4)
        s = 0.02
        # ReplicatedLinear (torch) layout: weight [out, in], bias [out]
        self.in_proj_w = s * jax.random.normal(k1, (3 * embed_dim, embed_dim), jnp.float32)
        self.in_proj_b = s * jax.random.normal(k2, (3 * embed_dim,), jnp.float32)
        self.out_proj_w = s * jax.random.normal(k3, (embed_dim, embed_dim), jnp.float32)
        self.out_proj_b = s * jax.random.normal(k4, (embed_dim,), jnp.float32)

        # --- one-time kernel-side precompute (not per forward) ---
        # Fold 1/sqrt(head_dim) into the q rows of in_proj and pre-transpose
        # weights to [Din, Dout] so linear() never transposes in the hot path.
        hd = self.head_dim
        qkv_scale = jnp.tile(
            jnp.concatenate([jnp.full((hd,), 1.0 / self.norm_factor, jnp.float32),
                             jnp.ones((2 * hd,), jnp.float32)]),
            num_heads)                                            # [3*embed_dim]
        self.in_proj_wt = (self.in_proj_w * qkv_scale[:, None]).T  # [E, 3E]
        self.in_proj_b_scaled = self.in_proj_b * qkv_scale         # [3E]
        self.out_proj_wt = self.out_proj_w.T                       # [E, E]


def visual_attention_forward(params, x, attn_mask=None):
    """x: [sq, b, h] -> [sq, b, h]  (matches torch VisualAttention.forward)."""
    sq, b, h = x.shape
    nh, hd = params.num_heads, params.head_dim

    # in_proj on flattened tokens (tiled MXU matmul).
    mixed = linear(x.reshape(sq * b, h), params.in_proj_wt, params.in_proj_b_scaled)

    # [sq*b, 3E] -> [sq, b, nh, 3, hd] -> one transpose -> [3, b, nh, sq, hd]
    mixed = mixed.reshape(sq, b, nh, 3, hd)
    qkv = jnp.transpose(mixed, (3, 1, 2, 0, 4))
    q, k, v = qkv[0], qkv[1], qkv[2]                 # each [b, nh, sq, hd]

    ctx = attention_core(q, k, v, attn_mask)         # [b, nh, sq, hd]

    # [b, nh, sq, hd] -> [sq, b, nh, hd] -> [sq*b, h]
    ctx = jnp.transpose(ctx, (2, 0, 1, 3)).reshape(sq * b, h)
    out = linear(ctx, params.out_proj_wt, params.out_proj_b)
    return out.reshape(sq, b, h)


# ----------------------------- reference (pure jnp) ---------------------------

def reference_forward(params, x, attn_mask=None):
    sq, b, h = x.shape
    nh, hd = params.num_heads, params.head_dim
    mixed = x.reshape(sq * b, h) @ params.in_proj_w.T + params.in_proj_b
    mixed = mixed.reshape(sq, b, nh, 3 * hd)
    q, k, v = mixed[..., :hd], mixed[..., hd:2 * hd], mixed[..., 2 * hd:]
    q = jnp.transpose(q.reshape(sq, b * nh, hd), (1, 0, 2)) / params.norm_factor
    k = jnp.transpose(k.reshape(sq, b * nh, hd), (1, 0, 2))
    v = jnp.transpose(v.reshape(sq, b * nh, hd), (1, 0, 2))
    scores = jnp.einsum("bqd,bkd->bqk", q, k)
    if attn_mask is not None:
        scores = scores + attn_mask
    p = jax.nn.softmax(scores, axis=-1)
    ctx = jnp.einsum("bqk,bkd->bqd", p, v)
    ctx = jnp.transpose(ctx.reshape(b, nh, sq, hd), (2, 0, 1, 3)).reshape(sq, b, h)
    return (ctx.reshape(sq * b, h) @ params.out_proj_w.T + params.out_proj_b).reshape(sq, b, h)


# ------------------------------------ main ------------------------------------

if __name__ == "__main__":
    key = jax.random.PRNGKey(0)
    k_param, k_x, k_m = jax.random.split(key, 3)

    sq, b, embed_dim, num_heads = 8, 2, 32, 4
    params = VisualAttentionParams(embed_dim, num_heads, k_param)
    x = jax.random.normal(k_x, (sq, b, embed_dim), jnp.float32)

    # no-mask path: no zero-mask is materialized or DMA'd.
    out = jax.block_until_ready(visual_attention_forward(params, x, attn_mask=None))
    ref = reference_forward(params, x, attn_mask=None)
    assert out.shape == (sq, b, embed_dim)
    assert jnp.allclose(out, ref, atol=1e-3, rtol=1e-3), "mismatch vs reference (no mask)"

    # shared additive mask path: a single [sq, sq] mask shared by all b*nh heads.
    mask = 0.5 * jax.random.normal(k_m, (sq, sq), jnp.float32)
    out_m = jax.block_until_ready(visual_attention_forward(params, x, attn_mask=mask))
    ref_m = reference_forward(params, x, attn_mask=mask)
    assert jnp.allclose(out_m, ref_m, atol=1e-3, rtol=1e-3), "mismatch vs reference (mask)"

    print("KERNEL_OK")
</pallas_src>

<mosaic_0001>
module attributes {stable_mosaic.version = 11 : i64} {
  func.func @_linear_kernel(%arg0: i32, %arg1: i32, %arg2: i32, %arg3: memref<16x32xf32, #tpu.memory_space<vmem>>, %arg4: memref<32x96xf32, #tpu.memory_space<vmem>>, %arg5: memref<1x96xf32, #tpu.memory_space<vmem>>, %arg6: memref<16x96xf32, #tpu.memory_space<vmem>>, %arg7: memref<16x96xf32, #tpu.memory_space<vmem>>) attributes {dimension_semantics = [#tpu.dimension_semantics<parallel>, #tpu.dimension_semantics<parallel>, #tpu.dimension_semantics<arbitrary>], iteration_bounds = array<i64: 1, 1, 1>, scalar_prefetch = 0 : i64, scratch_operands = 1 : i64, tpu.core_type = #tpu.core_type<tc>, window_params = [{transform_indices = @transform_0, window_bounds = array<i64: 16, 32>}, {transform_indices = @transform_1, window_bounds = array<i64: 32, 96>}, {transform_indices = @transform_2, window_bounds = array<i64: 1, 96>}, {transform_indices = @transform_3, window_bounds = array<i64: 16, 96>}]} {
    %c0_i32 = arith.constant 0 : i32
    %0 = arith.cmpi eq, %arg2, %c0_i32 : i32
    %1 = arith.extui %0 : i1 to i32
    %c0_i32_0 = arith.constant 0 : i32
    %2 = arith.cmpi ne, %1, %c0_i32_0 : i32
    scf.if %2 {
      %cst_10 = arith.constant 0.000000e+00 : f32
      %12 = vector.broadcast %cst_10 : f32 to vector<16x96xf32>
      %c0_11 = arith.constant 0 : index
      %c0_12 = arith.constant 0 : index
      %13 = vector.load %arg7[%c0_11, %c0_12] : memref<16x96xf32, #tpu.memory_space<vmem>>, vector<16x96xf32>
      tpu.vector_store %arg7[%c0_11, %c0_12], %12 {strides = array<i32>} : memref<16x96xf32, #tpu.memory_space<vmem>>, vector<16x96xf32>,
    } else {
    }
    %c0 = arith.constant 0 : index
    %c0_1 = arith.constant 0 : index
    %3 = vector.load %arg7[%c0, %c0_1] : memref<16x96xf32, #tpu.memory_space<vmem>>, vector<16x96xf32>
    %c0_2 = arith.constant 0 : index
    %c0_3 = arith.constant 0 : index
    %4 = vector.load %arg3[%c0_2, %c0_3] : memref<16x32xf32, #tpu.memory_space<vmem>>, vector<16x32xf32>
    %c0_4 = arith.constant 0 : index
    %c0_5 = arith.constant 0 : index
    %5 = vector.load %arg4[%c0_4, %c0_5] : memref<32x96xf32, #tpu.memory_space<vmem>>, vector<32x96xf32>
    %cst = arith.constant dense<0.000000e+00> : vector<16x96xf32>
    %6 = tpu.matmul %4, %5, %cst {dimension_numbers = #tpu.dot_dimension_numbers<[1], [0], [0], [1], [0, 0, 1, 1], [], []>} : vector<16x32xf32>, vector<32x96xf32>, vector<16x96xf32> -> vector<16x96xf32>
    %7 = arith.addf %3, %6 : vector<16x96xf32>
    %c0_6 = arith.constant 0 : index
    %c0_7 = arith.constant 0 : index
    %8 = vector.load %arg7[%c0_6, %c0_7] : memref<16x96xf32, #tpu.memory_space<vmem>>, vector<16x96xf32>
    tpu.vector_store %arg7[%c0_6, %c0_7], %7 {strides = array<i32>} : memref<16x96xf32, #tpu.memory_space<vmem>>, vector<16x96xf32>,
    %c0_i32_8 = arith.constant 0 : i32
    %9 = arith.cmpi eq, %arg2, %c0_i32_8 : i32
    %10 = arith.extui %9 : i1 to i32
    %c0_i32_9 = arith.constant 0 : i32
    %11 = arith.cmpi ne, %10, %c0_i32_9 : i32
    scf.if %11 {
      %c0_10 = arith.constant 0 : index
      %c0_11 = arith.constant 0 : index
      %12 = vector.load %arg7[%c0_10, %c0_11] : memref<16x96xf32, #tpu.memory_space<vmem>>, vector<16x96xf32>
      %c0_12 = arith.constant 0 : index
      %c0_13 = arith.constant 0 : index
      %13 = vector.load %arg5[%c0_12, %c0_13] : memref<1x96xf32, #tpu.memory_space<vmem>>, vector<1x96xf32>
      %14 = vector.broadcast %13 : vector<1x96xf32> to vector<16x96xf32>
      %15 = arith.addf %12, %14 : vector<16x96xf32>
      %c0_14 = arith.constant 0 : index
      %c0_15 = arith.constant 0 : index
      %16 = vector.load %arg6[%c0_14, %c0_15] : memref<16x96xf32, #tpu.memory_space<vmem>>, vector<16x96xf32>
      tpu.vector_store %arg6[%c0_14, %c0_15], %15 {strides = array<i32>} : memref<16x96xf32, #tpu.memory_space<vmem>>, vector<16x96xf32>,
    } else {
    }
    return
  }
  func.func @transform_0(%arg0: i32, %arg1: i32, %arg2: i32) -> (i32, i32) {
    %c0_i32 = arith.constant 0 : i32
    return %arg0, %arg2 : i32, i32
  }
  func.func @transform_1(%arg0: i32, %arg1: i32, %arg2: i32) -> (i32, i32) {
    %c0_i32 = arith.constant 0 : i32
    return %arg2, %arg1 : i32, i32
  }
  func.func @transform_2(%arg0: i32, %arg1: i32, %arg2: i32) -> (i32, i32) {
    %c0_i32 = arith.constant 0 : i32
    %c0_i32_0 = arith.constant 0 : i32
    return %c0_i32, %arg1 : i32, i32
  }
  func.func @transform_3(%arg0: i32, %arg1: i32, %arg2: i32) -> (i32, i32) {
    %c0_i32 = arith.constant 0 : i32
    return %arg0, %arg1 : i32, i32
  }
}

</mosaic_0001>

<bundles_post_ra>
// kernel: tpu_custom_call.1
= control target key start
LH: loop header
LB: loop body
LE: loop exit
PB: predicated region body
PF: predicated region fallthrough
CT: control target
= control target key end

     0   :  { %8 = vsyncpa [#allocation4], 0  ;;  %s365_s0 = inlined_call_operand.hbm [shape: f32[16,32], index: 0, kind: input, shape index: {}]   ;;  %s366_s1 = inlined_call_operand.hbm [shape: f32[32,96], index: 1, kind: input, shape index: {}]   ;;  %s367_s2 = inlined_call_operand.vmem [shape: f32[1,96], index: 2, kind: input, shape index: {}]   ;;  %s368_s3 = inlined_call_operand.hbm [shape: f32[16,96], index: 3, kind: output, shape index: {}]  }
   0x1   :  { %9 = vsyncpa [#allocation7], 0 }
   0x2   :  { %10 = vsyncpa [#allocation5], 0  ;;  %s285_s12 = smov [#allocation3]   ;;  %s213_s16 = scalar_lea.hbm %s365_s0, 256 }
   0x3   :  { %s16_s13 = sshll.u32 %s285_s12, 4  ;;  %p214_p0 = scmp.ne.s32.totalorder %s365_s0, %s213_s16  ;;  %s17_s13 = int_to_ptr.vmem [resolvable:$true] %s16_s13 }
   0x4   :  { %p217_p1 = scmp.lt.u32.totalorder %s213_s16, %s365_s0 }
   0x6   :  { %p219_p2 = pnand %p217_p1, %p214_p0 }
   0x8   :  { %222 = shalt.err (!%p219_p2)
}
   0x9   :  { %s223_s21 = scalar_lea.vmem %s17_s13, 256  ;;  %p228_p4 = scmp.lt.s32.totalorder %s17_s13, %s17_s13 }
   0xa   :  { %p224_p3 = scmp.ne.s32.totalorder %s17_s13, %s223_s21  ;;  %p229_p5 = scmp.lt.s32.totalorder %s223_s21, %s223_s21 }
   0xc   :  { %p230_p6 = por %p229_p5, %p228_p4 }
   0xe   :  { %p231_p7 = pnand %p230_p6, %p224_p3 }
  0x10   :  { %234 = shalt.err (!%p231_p7)
}
  0x11   :  { %s286_s22 = smov 128   ;;  %s287_s23 = smov 8  }
  0x12   :  { %22 = dma.hbm_to_vmem [thread:$0]  %s365_s0, 256, %s17_s13, [#allocation4], %s286_s22, %s286_s22, %s287_s23  }
  0x13   :  { %s288_s26 = smov [#allocation6]   ;;  %s235_s30 = scalar_lea.hbm %s366_s1, 512 }
  0x14   :  { %s28_s27 = sshll.u32 %s288_s26, 4  ;;  %p236_p8 = scmp.ne.s32.totalorder %s366_s1, %s235_s30  ;;  %s29_s27 = int_to_ptr.vmem [resolvable:$true] %s28_s27 }
  0x15   :  { %p239_p9 = scmp.lt.u32.totalorder %s235_s30, %s366_s1 }
  0x17   :  { %p241_p10 = pnand %p239_p9, %p236_p8 }
  0x19   :  { %244 = shalt.err (!%p241_p10)
}
  0x1a   :  { %s245_s8 = scalar_lea.vmem %s29_s27, 512  ;;  %p250_p12 = scmp.lt.s32.totalorder %s29_s27, %s29_s27 }
  0x1b   :  { %p246_p11 = scmp.ne.s32.totalorder %s29_s27, %s245_s8  ;;  %p251_p13 = scmp.lt.s32.totalorder %s245_s8, %s245_s8 }
  0x1d   :  { %p252_p0 = por %p251_p13, %p250_p12 }
  0x1f   :  { %p253_p1 = pnand %p252_p0, %p246_p11 }
  0x21   :  { %256 = shalt.err (!%p253_p1)
}
  0x22   :  { %34 = dma.hbm_to_vmem [thread:$0]  %s366_s1, 512, %s29_s27, [#allocation7], %s286_s22, %s286_s22, %s287_s23  }
  0x23   :  { %279 = dma.done.wait [#allocation4], 256  }
  0x24   :  { %280 = vsyncadd [#allocation4], 4294967040 }
  0x25   :  { %281 = dma.done.wait [#allocation7], 512  }
  0x26   :  { %282 = vsyncadd [#allocation7], 4294966784  ;;  %vm47_vm0 = vcmask 785408   ;;  %v289_v0 = vmov 0.0   ;;  %vm58_vm1 = vcmask 261120   ;;  %v54_v1 = vld [vmem:[#allocation6] sm:$0xff] }
  0x27   :  { %49 = vst.msk [vmem:[#allocation2 + $0x8] sm:$0xff] %vm47_vm0, %v289_v0  ;;  %48 = vst.msk [vmem:[#allocation2] sm:$0xff] %vm47_vm0, %v289_v0  ;;  %v55_v2 = vld [vmem:[#allocation6 + $0x8] sm:$0xff]  ;;  %v56_v3 = vld [vmem:[#allocation6 + $0x10] sm:$0xff]  ;;  %s290_s11 = smov [#allocation8]  }
  0x28   :  { %v199_v4 = vpack.c.bf16 %v55_v2, %v54_v1  ;;  %v57_v5 = vld [vmem:[#allocation6 + $0x18] sm:$0xff]  ;;  %v52_v6 = vld [vmem:[#allocation3] sm:$0xff]  ;;  %v181_v15 = vld [vmem:[%s367_s2] ss:$0 sm:$0xff]  ;;  %s166_s12 = sshll.u32 %s290_s11, 4  ;;  %s167_s12 = int_to_ptr.vmem [resolvable:$true] %s166_s12 }
  0x29   :  { %v203_v7 = vpack.c.bf16 %v57_v5, %v56_v3  ;;  %196 = vmatprep.mubr.msk.f32.mxu0 %vm58_vm1, %v52_v6  ;;  %v53_v8 = vld [vmem:[#allocation3 + $0x8] sm:$0xff]  ;;  %s257_s13 = scalar_lea.vmem %s167_s12, 256  ;;  %p262_p3 = scmp.lt.s32.totalorder %s167_s12, %s167_s12 }
  0x2a   :  { %200 = vmatprep.subr.bf16.mxu0 %v199_v4  ;;  %p258_p2 = scmp.ne.s32.totalorder %s167_s12, %s257_s13  ;;  %p263_p4 = scmp.lt.s32.totalorder %s257_s13, %s257_s13 }
  0x2b   :  { %202 = vmatpush3.bf16.msra.mxu0 %v199_v4 }
  0x2c   :  { %204 = vmatprep.subr.bf16.mxu0 %v203_v7  ;;  %p264_p5 = por %p263_p4, %p262_p3 }
  0x2e   :  { %v51_v9 = vld [vmem:[#allocation2 + $0x8] sm:$0xff]  ;;  %v50_v10 = vld [vmem:[#allocation2] sm:$0xff]  ;;  %p265_p6 = pnand %p264_p5, %p258_p2 }
  0x2f   :  { %206 = vmatpush3.bf16.msra.mxu0 %v203_v7 }
  0x32   :  { %197 = vmatmul.mubr.msk.f32.vlgmr.msra.gmra.mrb[0].mxu0 %vm58_vm1, %v53_v8 }
 0x105   :  { %v198_v11 = vpop.f32.mrb[0].mxu0 }
 0x106   :  { %v141_v12 = vadd.f32 %v198_v11, %v51_v9  ;;  %v131_v13 = vpop.f32.mrb[1].mxu0 }
 0x107   :  { %v140_v14 = vadd.f32 %v131_v13, %v50_v10 }
 0x108   :  { %144 = vst.msk [vmem:[#allocation2 + $0x8] sm:$0xff] %vm47_vm0, %v141_v12 }
 0x109   :  { %143 = vst.msk [vmem:[#allocation2] sm:$0xff] %vm47_vm0, %v140_v14 }
 0x10f   :  { %v149_v16 = vld [vmem:[#allocation2 + $0x8] sm:$0xff] }
 0x110   :  { %v148_v17 = vld [vmem:[#allocation2] sm:$0xff]  ;;  %v158_v18 = vadd.f32 %v181_v15, %v149_v16 }
 0x111   :  { %v157_v19 = vadd.f32 %v181_v15, %v148_v17 }
 0x112   :  { %160 = vst.msk [vmem:[#allocation8 + $0x8] sm:$0xff] %vm47_vm0, %v158_v18 }
 0x113   :  { %159 = vst.msk [vmem:[#allocation8] sm:$0xff] %vm47_vm0, %v157_v19 }
 0x114   :  { %268 = shalt.err (!%p265_p6)
}
 0x115   :  { %s269_s15 = scalar_lea.hbm %s368_s3, 256 }
 0x116   :  { %p270_p7 = scmp.ne.s32.totalorder %s368_s3, %s269_s15  ;;  %p273_p8 = scmp.lt.u32.totalorder %s269_s15, %s368_s3 }
 0x118   :  { %p275_p9 = pnand %p273_p8, %p270_p7 }
 0x11a   :  { %278 = shalt.err (!%p275_p9)
}
 0x11b   :  { %172 = dma.vmem_to_hbm [thread:$0]  %s167_s12, 256, %s368_s3, [#allocation5], %s286_s22, %s286_s22, %s287_s23  }
 0x11c   :  { %283 = dma.done.wait [#allocation5], 256  }
 0x11d   :  { %284 = vsyncadd [#allocation5], 4294967040 }
 0x11e   :  { %176 = vsyncpa [#allocation4], 1 }
 0x11f   :  { %177 = vsyncpa [#allocation7], 1 }
 0x120   :  { %178 = vsyncpa [#allocation5], 1 }

</bundles_post_ra>
